<compile_context>
chip_gen: v5e
topology: v5e:2x2
jax: 0.10.0
libtpu: 0.0.40
codegen_flags: <defaults>
</compile_context>

<pallas_src>
import jax
import jax.numpy as jnp
from jax.experimental import pallas as pl
from jax.experimental.pallas import tpu as pltpu  # noqa: F401  (kept for TPU-specific extensions)


def _u_func_kernel(slab_ref, w1_ref, w2_ref, uref_ref, out_ref):
    """u = (tanh([x|xe|1]@W1') - tanh([x|0|1]@W1')) @ W2_pad + uref_pad.

    slab_ref : (2*bsp, 2*nx+1) f32   rows [0, bsp) = [x | xe | 1],
                                     rows [bsp, 2*bsp) = [x | 0 | 1]
    w1_ref   : (2*nx+1, H)     f32   W1 with b1 appended as the last row
    w2_ref   : (H, Np)         f32   W2 zero-padded to lane width Np (mult of 128)
    uref_ref : (bsp, Np)       f32   uref zero-padded to lane width
    out_ref  : (bsp, Np)       f32
    """
    bsp = out_ref.shape[0]

    # Single layer-1 matmul covering both MLP evaluations; b1 is folded into W1'
    # via the constant-1 slab column, so no separate bias add / DMA.
    h = jnp.tanh(jnp.dot(slab_ref[...], w1_ref[...],
                         preferred_element_type=jnp.float32))

    # b2 cancels exactly in MLP(x, xe) - MLP(x, 0); sublane-aligned split (bsp % 8 == 0).
    h_diff = h[:bsp, :] - h[bsp:, :]

    # Lane-dense second matmul + uref add (padded columns are exactly zero).
    out_ref[...] = (jnp.dot(h_diff, w2_ref[...],
                            preferred_element_type=jnp.float32)
                    + uref_ref[...]).astype(out_ref.dtype)


def _round_up(n, m):
    return ((n + m - 1) // m) * m


def u_func_forward(x, xe, uref, params):
    """JAX wrapper reproducing U_FUNC.forward.

    x, xe : (bs, num_dim_x, 1) float32
    uref  : (bs, num_dim_control, 1) float32
    returns u : (bs, num_dim_control, 1) float32
    """
    w1, b1, w2 = params["w1"], params["b1"], params["w2"]
    bs = x.shape[0]
    num_dim_x = x.shape[1]
    hidden = w1.shape[1]
    num_dim_control = w2.shape[1]

    # Pad batch to a sublane multiple (>=8) and the control/lane dim to 128.
    bsp = max(8, _round_up(bs, 8))
    ncp = _round_up(max(num_dim_control, 128), 128)

    x2 = jnp.zeros((bsp, num_dim_x), jnp.float32).at[:bs].set(x[..., 0])
    xe2 = jnp.zeros((bsp, num_dim_x), jnp.float32).at[:bs].set(xe[..., 0])
    ones = jnp.ones((bsp, 1), jnp.float32)

    # Fused activation slab: top half = [x | xe | 1], bottom half = [x | 0 | 1].
    slab = jnp.concatenate(
        [jnp.concatenate([x2, xe2, ones], axis=1),
         jnp.concatenate([x2, jnp.zeros_like(xe2), ones], axis=1)],
        axis=0)                                                  # (2*bsp, 2*nx+1)

    # W1 with b1 folded in as an extra input row -> single (2*nx+1, H) tile.
    w1_aug = jnp.concatenate([w1, b1.reshape(1, hidden)], axis=0)

    # Lane-dense padded W2, uref (padding is zeros -> exact).
    w2_pad = jnp.zeros((hidden, ncp), jnp.float32).at[:, :num_dim_control].set(w2)
    uref_pad = (jnp.zeros((bsp, ncp), jnp.float32)
                .at[:bs, :num_dim_control].set(uref[..., 0]))

    full = lambda a: pl.BlockSpec(a.shape, lambda: (0,) * a.ndim)

    out = pl.pallas_call(
        _u_func_kernel,
        out_shape=jax.ShapeDtypeStruct((bsp, ncp), jnp.float32),
        grid=(),
        in_specs=[full(slab), full(w1_aug), full(w2_pad), full(uref_pad)],
        out_specs=pl.BlockSpec((bsp, ncp), lambda: (0, 0)),
    )(slab, w1_aug, w2_pad, uref_pad)

    # reshape(bs, num_dim_control, -1)  with -1 == 1
    return out[:bs, :num_dim_control][..., None]


def init_params(key, num_dim_x, num_dim_control, hidden=128):
    k1, k2, k3, k4 = jax.random.split(key, 4)
    in_dim = 2 * num_dim_x
    # deterministic "PyTorch-ish" uniform init
    lim1 = 1.0 / jnp.sqrt(in_dim)
    lim2 = 1.0 / jnp.sqrt(hidden)
    return {
        "w1": jax.random.uniform(k1, (in_dim, hidden), jnp.float32, -lim1, lim1),
        "b1": jax.random.uniform(k2, (hidden,), jnp.float32, -lim1, lim1),
        "w2": jax.random.uniform(k3, (hidden, num_dim_control), jnp.float32, -lim2, lim2),
        "b2": jax.random.uniform(k4, (num_dim_control,), jnp.float32, -lim2, lim2),
    }


def _reference(x, xe, uref, params):
    """Pure-JAX reference: literal two-MLP form of the PyTorch module."""
    def mlp(z):
        h = jnp.tanh(z @ params["w1"] + params["b1"])
        return h @ params["w2"] + params["b2"]
    in_xe = jnp.concatenate([x[..., 0], xe[..., 0]], axis=1)
    in_x0 = jnp.concatenate([x[..., 0], jnp.zeros_like(xe[..., 0])], axis=1)
    return (mlp(in_xe) - mlp(in_x0) + uref[..., 0])[..., None]


if __name__ == "__main__":
    num_dim_x = 4        # CAR state dim
    num_dim_control = 2  # CAR control dim
    hidden = 128
    bs = 8

    key = jax.random.PRNGKey(0)
    kp, kx, ke, ku = jax.random.split(key, 4)

    params = init_params(kp, num_dim_x, num_dim_control, hidden)
    x = jax.random.normal(kx, (bs, num_dim_x, 1), jnp.float32)
    xe = jax.random.normal(ke, (bs, num_dim_x, 1), jnp.float32)
    uref = jax.random.normal(ku, (bs, num_dim_control, 1), jnp.float32)

    u = u_func_forward(x, xe, uref, params)
    u = jax.block_until_ready(u)

    u_ref = _reference(x, xe, uref, params)
    assert u.shape == (bs, num_dim_control, 1)
    assert jnp.allclose(u, u_ref, atol=1e-5, rtol=1e-5)

    print("KERNEL_OK")
</pallas_src>

<mosaic_0001>
module attributes {stable_mosaic.version = 11 : i64} {
  func.func @_u_func_kernel(%arg0: memref<16x9xf32, #tpu.memory_space<vmem>>, %arg1: memref<9x128xf32, #tpu.memory_space<vmem>>, %arg2: memref<128x128xf32, #tpu.memory_space<vmem>>, %arg3: memref<8x128xf32, #tpu.memory_space<vmem>>, %arg4: memref<8x128xf32, #tpu.memory_space<vmem>>) attributes {dimension_semantics = [], scalar_prefetch = 0 : i64, scratch_operands = 0 : i64, tpu.core_type = #tpu.core_type<tc>} {
    %c0 = arith.constant 0 : index
    %c0_0 = arith.constant 0 : index
    %0 = vector.load %arg0[%c0, %c0_0] : memref<16x9xf32, #tpu.memory_space<vmem>>, vector<16x9xf32>
    %c0_1 = arith.constant 0 : index
    %c0_2 = arith.constant 0 : index
    %1 = vector.load %arg1[%c0_1, %c0_2] : memref<9x128xf32, #tpu.memory_space<vmem>>, vector<9x128xf32>
    %cst = arith.constant dense<0.000000e+00> : vector<16x128xf32>
    %2 = tpu.matmul %0, %1, %cst {dimension_numbers = #tpu.dot_dimension_numbers<[1], [0], [0], [1], [0, 0, 1, 1], [], []>} : vector<16x9xf32>, vector<9x128xf32>, vector<16x128xf32> -> vector<16x128xf32>
    %3 = math.tanh %2 : vector<16x128xf32>
    %4 = vector.extract_strided_slice %3 {offsets = [0, 0], sizes = [8, 128], strides = [1, 1]} : vector<16x128xf32> to vector<8x128xf32>
    %5 = vector.extract_strided_slice %3 {offsets = [8, 0], sizes = [8, 128], strides = [1, 1]} : vector<16x128xf32> to vector<8x128xf32>
    %6 = arith.subf %4, %5 : vector<8x128xf32>
    %c0_3 = arith.constant 0 : index
    %c0_4 = arith.constant 0 : index
    %7 = vector.load %arg2[%c0_3, %c0_4] : memref<128x128xf32, #tpu.memory_space<vmem>>, vector<128x128xf32>
    %cst_5 = arith.constant dense<0.000000e+00> : vector<8x128xf32>
    %8 = tpu.matmul %6, %7, %cst_5 {dimension_numbers = #tpu.dot_dimension_numbers<[1], [0], [0], [1], [0, 0, 1, 1], [], []>} : vector<8x128xf32>, vector<128x128xf32>, vector<8x128xf32> -> vector<8x128xf32>
    %c0_6 = arith.constant 0 : index
    %c0_7 = arith.constant 0 : index
    %9 = vector.load %arg3[%c0_6, %c0_7] : memref<8x128xf32, #tpu.memory_space<vmem>>, vector<8x128xf32>
    %10 = arith.addf %8, %9 : vector<8x128xf32>
    %c0_8 = arith.constant 0 : index
    %c0_9 = arith.constant 0 : index
    %11 = vector.load %arg4[%c0_8, %c0_9] : memref<8x128xf32, #tpu.memory_space<vmem>>, vector<8x128xf32>
    tpu.vector_store %arg4[%c0_8, %c0_9], %10 {strides = array<i32>} : memref<8x128xf32, #tpu.memory_space<vmem>>, vector<8x128xf32>,
    return
  }
}

</mosaic_0001>

<bundles_post_ra>
// kernel: tpu_custom_call.1
= control target key start
LH: loop header
LB: loop body
LE: loop exit
PB: predicated region body
PF: predicated region fallthrough
CT: control target
= control target key end

     0   :  { %9 = vsyncpa [#allocation3], 0  ;;  %s368_s0 = inlined_call_operand.hbm [shape: f32[16,9], index: 0, kind: input, shape index: {}]   ;;  %s369_s1 = inlined_call_operand.hbm [shape: f32[9,128], index: 1, kind: input, shape index: {}]   ;;  %s370_s2 = inlined_call_operand.hbm [shape: f32[128,128], index: 2, kind: input, shape index: {}]   ;;  %s371_s3 = inlined_call_operand.hbm [shape: f32[8,128], index: 3, kind: input, shape index: {}]   ;;  %s372_s4 = inlined_call_operand.hbm [shape: f32[8,128], index: 4, kind: output, shape index: {}]  }
   0x1   :  { %10 = vsyncpa [#allocation6], 0 }
   0x2   :  { %11 = vsyncpa [#allocation9], 0 }
   0x3   :  { %12 = vsyncpa [#allocation4], 0  ;;  %s30_s17 = sshll.u32 %s369_s1, 4  ;;  %s319_s18 = smov [#allocation5]   ;;  %s31_s17 = int_to_ptr.hbm [resolvable:$true] %s30_s17 }
   0x4   :  { %s32_s19 = sshll.u32 %s319_s18, 4  ;;  %s17_s22 = sshll.u32 %s368_s0, 4  ;;  %s33_s19 = int_to_ptr.vmem [resolvable:$true] %s32_s19  ;;  %s18_s22 = int_to_ptr.hbm [resolvable:$true] %s17_s22 }
   0x5   :  { %s320_s23 = smov 128   ;;  %s321_s24 = smov 8  }
   0x6   :  { %38 = dma.hbm_to_vmem [thread:$0]  %s31_s17, 256, %s33_s19, [#allocation6], %s320_s23, %s320_s23, %s321_s24  }
   0x7   :  { %s322_s25 = smov [#allocation2]   ;;  %s43_s29 = sshll.u32 %s370_s2, 4  ;;  %s44_s29 = int_to_ptr.hbm [resolvable:$true] %s43_s29 }
   0x8   :  { %s19_s26 = sshll.u32 %s322_s25, 4  ;;  %s57_s5 = sshll.u32 %s371_s3, 4  ;;  %s20_s26 = int_to_ptr.vmem [resolvable:$true] %s19_s26  ;;  %s58_s5 = int_to_ptr.hbm [resolvable:$true] %s57_s5 }
   0x9   :  { %25 = dma.hbm_to_vmem [thread:$0]  %s18_s22, 256, %s20_s26, [#allocation3], %s320_s23, %s320_s23, %s321_s24  }
   0xa   :  { %s323_s6 = smov [#allocation7]   ;;  %s324_s0 = smov [#allocation8]  }
   0xb   :  { %s45_s7 = sshll.u32 %s323_s6, 4  ;;  %s59_s8 = sshll.u32 %s324_s0, 4  ;;  %s46_s7 = int_to_ptr.vmem [resolvable:$true] %s45_s7  ;;  %s60_s8 = int_to_ptr.vmem [resolvable:$true] %s59_s8 }
   0xc   :  { %51 = dma.hbm_to_vmem [thread:$0]  %s44_s29, 2048, %s46_s7, [#allocation6], %s320_s23, %s320_s23, %s321_s24  }
   0xd   :  { %62 = dma.hbm_to_vmem [thread:$0]  %s58_s5, 128, %s60_s8, [#allocation9]  }
   0xe   :  { %311 = dma.done.wait [#allocation3], 256  }
   0xf   :  { %312 = vsyncadd [#allocation3], 4294967040 }
  0x10   :  { %313 = dma.done.wait [#allocation6], 2304  }
  0x11   :  { %314 = vsyncadd [#allocation6], 4294964992 }
  0x12   :  { %315 = dma.done.wait [#allocation9], 128  }
  0x13   :  { %316 = vsyncadd [#allocation9], 4294967168  ;;  %vm90_vm0 = vcmask 1040384   ;;  %v82_v0 = vld [vmem:[#allocation5 + $0x8] sm:$0x1]  ;;  %v81_v1 = vld [vmem:[#allocation5] sm:$0xff] }
  0x14   :  { %177 = vmatpush.msk.msra.mxu0 %vm90_vm0, %v82_v0  ;;  %v79_v2 = vld [vmem:[#allocation2] sm:$0xff]  ;;  %vm83_vm1 = vcmask 72704   ;;  %v135_v3 = vld [vmem:[#allocation7 + $0x78] sm:$0xff]  ;;  %v134_v4 = vld [vmem:[#allocation7 + $0x70] sm:$0xff]  ;;  %s325_s2 = smov [#allocation10]   ;;  %s165_s11 = sshll.u32 %s372_s4, 4  ;;  %s166_s11 = int_to_ptr.hbm [resolvable:$true] %s165_s11 }
  0x15   :  { %137 = vmatpush.msra.mxu1 %v135_v3  ;;  %v133_v5 = vld [vmem:[#allocation7 + $0x68] sm:$0xff]  ;;  %v132_v6 = vld [vmem:[#allocation7 + $0x60] sm:$0xff]  ;;  %v131_v7 = vld [vmem:[#allocation7 + $0x58] sm:$0xff]  ;;  %s163_s3 = sshll.u32 %s325_s2, 4  ;;  %s164_s3 = int_to_ptr.vmem [resolvable:$true] %s163_s3 }
  0x16   :  { %109 = vmatpush.msra.mxu0 %v81_v1  ;;  %v80_v8 = vld [vmem:[#allocation2 + $0x8] sm:$0xff]  ;;  %v130_v9 = vld [vmem:[#allocation7 + $0x50] sm:$0xff]  ;;  %v128_v11 = vld [vmem:[#allocation7 + $0x40] sm:$0xff] }
  0x17   :  { %178 = vmatmul.msk.f32.vlgmr.msra.gmra.mxu0 %vm83_vm1, %v79_v2  ;;  %138 = vmatpush.msra.mxu1 %v134_v4  ;;  %v129_v10 = vld [vmem:[#allocation7 + $0x48] sm:$0xff]  ;;  %v127_v12 = vld [vmem:[#allocation7 + $0x38] sm:$0xff]  ;;  %v126_v13 = vld [vmem:[#allocation7 + $0x30] sm:$0xff] }
  0x18   :  { %v125_v14 = vld [vmem:[#allocation7 + $0x28] sm:$0xff]  ;;  %v124_v15 = vld [vmem:[#allocation7 + $0x20] sm:$0xff]  ;;  %v123_v16 = vld [vmem:[#allocation7 + $0x18] sm:$0xff] }
  0x19   :  { %139 = vmatpush.msra.mxu1 %v133_v5  ;;  %v122_v17 = vld [vmem:[#allocation7 + $0x10] sm:$0xff]  ;;  %v121_v18 = vld [vmem:[#allocation7 + $0x8] sm:$0xff]  ;;  %v120_v19 = vld [vmem:[#allocation7] sm:$0xff] }
  0x1a   :  { %v136_v25 = vld [vmem:[#allocation8] sm:$0xff] }
  0x1b   :  { %140 = vmatpush.msra.mxu1 %v132_v6 }
  0x1d   :  { %141 = vmatpush.msra.mxu1 %v131_v7 }
  0x1f   :  { %179 = vmatmul.msk.f32.gmra.mxu0 %vm83_vm1, %v80_v8  ;;  %142 = vmatpush.msra.mxu1 %v130_v9 }
  0x21   :  { %143 = vmatpush.msra.mxu1 %v129_v10 }
  0x23   :  { %144 = vmatpush.msra.mxu1 %v128_v11 }
  0x25   :  { %145 = vmatpush.msra.mxu1 %v127_v12 }
  0x27   :  { %146 = vmatpush.msra.mxu1 %v126_v13 }
  0x29   :  { %147 = vmatpush.msra.mxu1 %v125_v14 }
  0x2b   :  { %148 = vmatpush.msra.mxu1 %v124_v15 }
  0x2d   :  { %149 = vmatpush.msra.mxu1 %v123_v16 }
  0x2f   :  { %150 = vmatpush.msra.mxu1 %v122_v17 }
  0x31   :  { %151 = vmatpush.msra.mxu1 %v121_v18 }
  0x33   :  { %152 = vmatpush.msra.mxu1 %v120_v19 }
  0x94   :  { %v111_v20 = vpop.f32.mrf.mxu0 }
  0x95   :  { %187 = vtanh.f32 %v111_v20 }
  0x9b   :  { %v188_v22 = vpop.eup %187 }
  0x9c   :  { %v114_v21 = vpop.f32.mrf.mxu0 }
  0x9d   :  { %189 = vtanh.f32 %v114_v21 }
  0xa3   :  { %v190_v23 = vpop.eup %189 }
  0xa4   :  { %v119_v24 = vsub.f32 %v188_v22, %v190_v23 }
  0xa6   :  { %153 = vmatmul.f32.vlgmr.msra.gmra.mxu1 %v119_v24 }
 0x123   :  { %v154_v26 = vpop.f32.mrf.mxu1 }
 0x124   :  { %v155_v27 = vadd.f32 %v154_v26, %v136_v25 }
 0x126   :  { %157 = vst [vmem:[#allocation10] sm:$0xff] %v155_v27 }
 0x127   :  { %168 = dma.vmem_to_hbm [thread:$0]  %s164_s3, 128, %s166_s11, [#allocation4]  }
 0x128   :  { %317 = dma.done.wait [#allocation4], 128  }
 0x129   :  { %318 = vsyncadd [#allocation4], 4294967168 }
 0x12a   :  { %173 = vsyncpa [#allocation3], 1 }
 0x12b   :  { %174 = vsyncpa [#allocation6], 1 }
 0x12c   :  { %175 = vsyncpa [#allocation9], 1 }
 0x12d   :  { %176 = vsyncpa [#allocation4], 1 }

</bundles_post_ra>
